<compile_context>
chip_gen: v7x
topology: tpu7x:2x2x1
jax: 0.10.0
libtpu: 0.0.40
codegen_flags: <defaults>
</compile_context>

<pallas_src>
import jax
import jax.numpy as jnp
from jax.experimental import pallas as pl
from jax.experimental.pallas import tpu as pltpu


def _round_up(x, m):
    return ((x + m - 1) // m) * m


# ----------------------------- Pallas kernel --------------------------------
def _fs_kernel(ids_ref, word_emb_ref, w_t_ref, b_ref, o_ref):
    """tanh( (sum_s E[ids[b,s]]) @ (W^T / S) + b ) for one batch tile.

    ids_ref      : (TB, S)        int32 word ids
    word_emb_ref : (W_pad, D_pad) f32 padded word-embedding table (resident)
    w_t_ref      : (D_pad, D_pad) f32 projection weight, transposed AND pre-scaled by 1/S
    b_ref        : (1, D_pad)     f32 projection bias (padded)
    o_ref        : (TB, D_pad)    f32 output query embeddings (padded)
    """
    ids = ids_ref[...]                                   # (TB, S) int32
    tb, s = ids.shape
    w_pad = word_emb_ref.shape[0]

    # Fused gather + sum over S as a bag-of-words count matrix -> MXU matmul.
    # (S is small; unrolled 2D compares keep everything lane-dense / 2D only.)
    lane_iota = jax.lax.broadcasted_iota(jnp.int32, (tb, w_pad), 1)
    counts = jnp.zeros((tb, w_pad), jnp.float32)
    for s_i in range(s):                                 # static, small unroll
        counts = counts + (ids[:, s_i:s_i + 1] == lane_iota).astype(jnp.float32)

    # sum_s E[ids[b, s]]  (padding word 0 has a zero row, matching torch.mean semantics)
    emb_sum = jnp.dot(counts, word_emb_ref[...],
                      preferred_element_type=jnp.float32)        # (TB, D_pad)  MXU
    # 1/S mean scale is already folded into w_t_ref
    proj = jnp.dot(emb_sum, w_t_ref[...],
                   preferred_element_type=jnp.float32)           # (TB, D_pad)  MXU
    o_ref[...] = jnp.tanh(proj + b_ref[...])                     # EUP + VPU


def fs_pallas(query_words, word_emb_pad, w_t_scaled_pad, bias_pad, *, tb=8):
    """query_words: (B, S) int32 -> (B_pad, D_pad) f32 (caller slices padding off)."""
    B, S = query_words.shape
    W_pad, D_pad = word_emb_pad.shape

    B_pad = _round_up(B, tb)
    if B_pad != B:
        query_words = jnp.pad(query_words, ((0, B_pad - B), (0, 0)))

    grid = (pl.cdiv(B_pad, tb),)

    cost = pl.CostEstimate(
        flops=2 * B_pad * W_pad * D_pad + 2 * B_pad * D_pad * D_pad,
        transcendentals=B_pad * D_pad,
        bytes_accessed=(B_pad * S * 4 + W_pad * D_pad * 4
                        + D_pad * D_pad * 4 + D_pad * 4 + B_pad * D_pad * 4),
    )

    return pl.pallas_call(
        _fs_kernel,
        out_shape=jax.ShapeDtypeStruct((B_pad, D_pad), jnp.float32),
        grid_spec=pltpu.PrefetchScalarGridSpec(
            num_scalar_prefetch=0,
            grid=grid,
            in_specs=[
                # batch-tiled word ids (pipelined across grid steps)
                pl.BlockSpec((tb, S), lambda i: (i, 0)),
                # embedding table / weight / bias: constant index_map -> stay resident in VMEM
                pl.BlockSpec((W_pad, D_pad), lambda i: (0, 0)),
                pl.BlockSpec((D_pad, D_pad), lambda i: (0, 0)),
                pl.BlockSpec((1, D_pad), lambda i: (0, 0)),
            ],
            out_specs=pl.BlockSpec((tb, D_pad), lambda i: (i, 0)),
        ),
        compiler_params=pltpu.CompilerParams(
            # batch axis is independent -> megacore-shardable (2 TCs on v7x)
            dimension_semantics=("parallel",),
            # small working set; 32 MiB is safe on v5e/v6e/v7x scoped VMEM
            vmem_limit_bytes=32 * 1024 * 1024,
        ),
        cost_estimate=cost,
    )(query_words, word_emb_pad, w_t_scaled_pad, bias_pad)


# ----------------------------- Model (JAX) -----------------------------------
class LSEModelPallas:
    def __init__(self, word_num, item_num, embedding_size, l2, key, batch_tile=8):
        self.l2 = l2
        self.D = embedding_size
        self.batch_tile = batch_tile
        k_word, k_proj_w, k_proj_b = jax.random.split(key, 3)

        # word embedding: normal(0, 0.1), padding_idx=0 row zeroed
        word_emb = 0.1 * jax.random.normal(
            k_word, (word_num, embedding_size), dtype=jnp.float32)
        word_emb = word_emb.at[0].set(0.0)
        self.word_embedding = word_emb

        # item embedding / bias: zeros
        self.item_embedding = jnp.zeros((item_num, embedding_size), jnp.float32)
        self.item_bias = jnp.zeros((item_num, 1), jnp.float32)

        # query projection: xavier normal weight (out=in=D), uniform(0, 0.1) bias
        std = (2.0 / (embedding_size + embedding_size)) ** 0.5
        w = std * jax.random.normal(
            k_proj_w, (embedding_size, embedding_size), dtype=jnp.float32)
        b = 0.1 * jax.random.uniform(
            k_proj_b, (embedding_size,), dtype=jnp.float32)
        self.proj_w = w        # (out, in), canonical nn.Linear layout
        self.proj_b = b        # (D,)

        # ---- lane-dense (multiple-of-128) padded copies for the kernel ----
        # All derived in one place from the canonical params to avoid desync.
        self.D_pad = _round_up(embedding_size, 128)
        self.W_pad = _round_up(word_num, 128)
        self.word_embedding_pad = (
            jnp.zeros((self.W_pad, self.D_pad), jnp.float32)
            .at[:word_num, :embedding_size].set(word_emb))
        self.proj_w_t_pad = (
            jnp.zeros((self.D_pad, self.D_pad), jnp.float32)
            .at[:embedding_size, :embedding_size].set(w.T))       # (in, out)
        self.proj_b_pad = (
            jnp.zeros((1, self.D_pad), jnp.float32)
            .at[0, :embedding_size].set(b))

    def _fs(self, words):
        # words: (B, S) int32 -> (B, D)
        B, S = words.shape
        # Fold the 1/S mean scale into the projection weight (free through the MXU).
        w_t_scaled = self.proj_w_t_pad * (1.0 / S)
        out = fs_pallas(words.astype(jnp.int32), self.word_embedding_pad,
                        w_t_scaled, self.proj_b_pad, tb=self.batch_tile)
        return out[:B, :self.D]

    def regularization_loss(self):
        return self.l2 * (jnp.linalg.norm(self.word_embedding)
                          + jnp.linalg.norm(self.item_embedding))

    def forward(self, items, query_words, mode, review_words=None, neg_items=None):
        if mode == 'output_embedding':
            item_embeddings = jnp.take(self.item_embedding, items, axis=0)
            item_biases = jnp.take(self.item_bias, items, axis=0)[:, 0]
            return item_embeddings, item_biases
        query_embeddings = self._fs(query_words)
        if mode == 'test':
            return query_embeddings
        # TODO(synk): 'train' mode requires external nce_loss; no clean equivalent here.
        raise NotImplementedError


# ----------------------------- main ------------------------------------------
if __name__ == "__main__":
    word_num = 64
    item_num = 16
    embedding_size = 32
    l2 = 1e-4
    B, S = 16, 8   # batch, query words per example (2 batch tiles of 8)

    key = jax.random.PRNGKey(0)
    k_model, k_items, k_words = jax.random.split(key, 3)

    model = LSEModelPallas(word_num, item_num, embedding_size, l2, k_model)

    items = jax.random.randint(k_items, (B,), 0, item_num, dtype=jnp.int32)
    query_words = jax.random.randint(k_words, (B, S), 0, word_num, dtype=jnp.int32)

    # 'test' mode: fused gather + mean + linear + tanh in one Pallas kernel
    q_emb = jax.block_until_ready(model.forward(items, query_words, mode='test'))
    assert q_emb.shape == (B, embedding_size)

    # 'output_embedding' mode (pure gathers, JAX glue)
    item_emb, item_b = model.forward(items, query_words, mode='output_embedding')
    jax.block_until_ready(item_emb)
    jax.block_until_ready(item_b)
    assert item_emb.shape == (B, embedding_size) and item_b.shape == (B,)

    # reference check for kernel correctness (matches torch.mean over S incl. padding id 0)
    gathered = jnp.take(model.word_embedding, query_words, axis=0)
    ref = jnp.tanh(jnp.mean(gathered, axis=1) @ model.proj_w.T + model.proj_b)
    assert jnp.allclose(q_emb, ref, atol=1e-4), "kernel mismatch vs reference"

    _ = jax.block_until_ready(model.regularization_loss())

    print("KERNEL_OK")
</pallas_src>

<mosaic_0001>
module attributes {stable_mosaic.version = 11 : i64} {
  func.func @_fs_kernel(%arg0: i32, %arg1: memref<8x8xi32, #tpu.memory_space<vmem>>, %arg2: memref<128x128xf32, #tpu.memory_space<vmem>>, %arg3: memref<128x128xf32, #tpu.memory_space<vmem>>, %arg4: memref<1x128xf32, #tpu.memory_space<vmem>>, %arg5: memref<8x128xf32, #tpu.memory_space<vmem>>) attributes {dimension_semantics = [#tpu.dimension_semantics<parallel>], iteration_bounds = array<i64: 2>, scalar_prefetch = 0 : i64, scratch_operands = 0 : i64, tpu.core_type = #tpu.core_type<tc>, window_params = [{transform_indices = @transform_0, window_bounds = array<i64: 8, 8>}, {pipeline_mode = #tpu.pipeline_mode<synchronous>, transform_indices = @transform_1, window_bounds = array<i64: 128, 128>}, {pipeline_mode = #tpu.pipeline_mode<synchronous>, transform_indices = @transform_2, window_bounds = array<i64: 128, 128>}, {pipeline_mode = #tpu.pipeline_mode<synchronous>, transform_indices = @transform_3, window_bounds = array<i64: 1, 128>}, {transform_indices = @transform_4, window_bounds = array<i64: 8, 128>}]} {
    %c0 = arith.constant 0 : index
    %c0_0 = arith.constant 0 : index
    %0 = vector.load %arg1[%c0, %c0_0] : memref<8x8xi32, #tpu.memory_space<vmem>>, vector<8x8xi32>
    %1 = tpu.iota {dimensions = array<i32: 1>} : vector<8x128xi32>
    %cst = arith.constant 0.000000e+00 : f32
    %2 = vector.broadcast %cst : f32 to vector<8x128xf32>
    %3 = vector.extract_strided_slice %0 {offsets = [0, 0], sizes = [8, 1], strides = [1, 1]} : vector<8x8xi32> to vector<8x1xi32>
    %4 = vector.broadcast %3 : vector<8x1xi32> to vector<8x128xi32>
    %5 = arith.cmpi eq, %4, %1 : vector<8x128xi32>
    %6 = arith.extui %5 : vector<8x128xi1> to vector<8x128xi32>
    %7 = arith.sitofp %6 : vector<8x128xi32> to vector<8x128xf32>
    %8 = arith.addf %2, %7 : vector<8x128xf32>
    %9 = vector.extract_strided_slice %0 {offsets = [0, 1], sizes = [8, 1], strides = [1, 1]} : vector<8x8xi32> to vector<8x1xi32>
    %10 = vector.broadcast %9 : vector<8x1xi32> to vector<8x128xi32>
    %11 = arith.cmpi eq, %10, %1 : vector<8x128xi32>
    %12 = arith.extui %11 : vector<8x128xi1> to vector<8x128xi32>
    %13 = arith.sitofp %12 : vector<8x128xi32> to vector<8x128xf32>
    %14 = arith.addf %8, %13 : vector<8x128xf32>
    %15 = vector.extract_strided_slice %0 {offsets = [0, 2], sizes = [8, 1], strides = [1, 1]} : vector<8x8xi32> to vector<8x1xi32>
    %16 = vector.broadcast %15 : vector<8x1xi32> to vector<8x128xi32>
    %17 = arith.cmpi eq, %16, %1 : vector<8x128xi32>
    %18 = arith.extui %17 : vector<8x128xi1> to vector<8x128xi32>
    %19 = arith.sitofp %18 : vector<8x128xi32> to vector<8x128xf32>
    %20 = arith.addf %14, %19 : vector<8x128xf32>
    %21 = vector.extract_strided_slice %0 {offsets = [0, 3], sizes = [8, 1], strides = [1, 1]} : vector<8x8xi32> to vector<8x1xi32>
    %22 = vector.broadcast %21 : vector<8x1xi32> to vector<8x128xi32>
    %23 = arith.cmpi eq, %22, %1 : vector<8x128xi32>
    %24 = arith.extui %23 : vector<8x128xi1> to vector<8x128xi32>
    %25 = arith.sitofp %24 : vector<8x128xi32> to vector<8x128xf32>
    %26 = arith.addf %20, %25 : vector<8x128xf32>
    %27 = vector.extract_strided_slice %0 {offsets = [0, 4], sizes = [8, 1], strides = [1, 1]} : vector<8x8xi32> to vector<8x1xi32>
    %28 = vector.broadcast %27 : vector<8x1xi32> to vector<8x128xi32>
    %29 = arith.cmpi eq, %28, %1 : vector<8x128xi32>
    %30 = arith.extui %29 : vector<8x128xi1> to vector<8x128xi32>
    %31 = arith.sitofp %30 : vector<8x128xi32> to vector<8x128xf32>
    %32 = arith.addf %26, %31 : vector<8x128xf32>
    %33 = vector.extract_strided_slice %0 {offsets = [0, 5], sizes = [8, 1], strides = [1, 1]} : vector<8x8xi32> to vector<8x1xi32>
    %34 = vector.broadcast %33 : vector<8x1xi32> to vector<8x128xi32>
    %35 = arith.cmpi eq, %34, %1 : vector<8x128xi32>
    %36 = arith.extui %35 : vector<8x128xi1> to vector<8x128xi32>
    %37 = arith.sitofp %36 : vector<8x128xi32> to vector<8x128xf32>
    %38 = arith.addf %32, %37 : vector<8x128xf32>
    %39 = vector.extract_strided_slice %0 {offsets = [0, 6], sizes = [8, 1], strides = [1, 1]} : vector<8x8xi32> to vector<8x1xi32>
    %40 = vector.broadcast %39 : vector<8x1xi32> to vector<8x128xi32>
    %41 = arith.cmpi eq, %40, %1 : vector<8x128xi32>
    %42 = arith.extui %41 : vector<8x128xi1> to vector<8x128xi32>
    %43 = arith.sitofp %42 : vector<8x128xi32> to vector<8x128xf32>
    %44 = arith.addf %38, %43 : vector<8x128xf32>
    %45 = vector.extract_strided_slice %0 {offsets = [0, 7], sizes = [8, 1], strides = [1, 1]} : vector<8x8xi32> to vector<8x1xi32>
    %46 = vector.broadcast %45 : vector<8x1xi32> to vector<8x128xi32>
    %47 = arith.cmpi eq, %46, %1 : vector<8x128xi32>
    %48 = arith.extui %47 : vector<8x128xi1> to vector<8x128xi32>
    %49 = arith.sitofp %48 : vector<8x128xi32> to vector<8x128xf32>
    %50 = arith.addf %44, %49 : vector<8x128xf32>
    %c0_1 = arith.constant 0 : index
    %c0_2 = arith.constant 0 : index
    %51 = vector.load %arg2[%c0_1, %c0_2] : memref<128x128xf32, #tpu.memory_space<vmem>>, vector<128x128xf32>
    %cst_3 = arith.constant dense<0.000000e+00> : vector<8x128xf32>
    %52 = tpu.matmul %50, %51, %cst_3 {dimension_numbers = #tpu.dot_dimension_numbers<[1], [0], [0], [1], [0, 0, 1, 1], [], []>} : vector<8x128xf32>, vector<128x128xf32>, vector<8x128xf32> -> vector<8x128xf32>
    %c0_4 = arith.constant 0 : index
    %c0_5 = arith.constant 0 : index
    %53 = vector.load %arg3[%c0_4, %c0_5] : memref<128x128xf32, #tpu.memory_space<vmem>>, vector<128x128xf32>
    %cst_6 = arith.constant dense<0.000000e+00> : vector<8x128xf32>
    %54 = tpu.matmul %52, %53, %cst_6 {dimension_numbers = #tpu.dot_dimension_numbers<[1], [0], [0], [1], [0, 0, 1, 1], [], []>} : vector<8x128xf32>, vector<128x128xf32>, vector<8x128xf32> -> vector<8x128xf32>
    %c0_7 = arith.constant 0 : index
    %c0_8 = arith.constant 0 : index
    %55 = vector.load %arg4[%c0_7, %c0_8] : memref<1x128xf32, #tpu.memory_space<vmem>>, vector<1x128xf32>
    %56 = vector.broadcast %55 : vector<1x128xf32> to vector<8x128xf32>
    %57 = arith.addf %54, %56 : vector<8x128xf32>
    %58 = math.tanh %57 : vector<8x128xf32>
    %c0_9 = arith.constant 0 : index
    %c0_10 = arith.constant 0 : index
    %59 = vector.load %arg5[%c0_9, %c0_10] : memref<8x128xf32, #tpu.memory_space<vmem>>, vector<8x128xf32>
    tpu.vector_store %arg5[%c0_9, %c0_10], %58 {strides = array<i32>} : memref<8x128xf32, #tpu.memory_space<vmem>>, vector<8x128xf32>,
    return
  }
  func.func @transform_0(%arg0: i32) -> (i32, i32) {
    %c0_i32 = arith.constant 0 : i32
    %c0_i32_0 = arith.constant 0 : i32
    return %arg0, %c0_i32 : i32, i32
  }
  func.func @transform_1(%arg0: i32) -> (i32, i32) {
    %c0_i32 = arith.constant 0 : i32
    %c0_i32_0 = arith.constant 0 : i32
    %c0_i32_1 = arith.constant 0 : i32
    return %c0_i32, %c0_i32_0 : i32, i32
  }
  func.func @transform_2(%arg0: i32) -> (i32, i32) {
    %c0_i32 = arith.constant 0 : i32
    %c0_i32_0 = arith.constant 0 : i32
    %c0_i32_1 = arith.constant 0 : i32
    return %c0_i32, %c0_i32_0 : i32, i32
  }
  func.func @transform_3(%arg0: i32) -> (i32, i32) {
    %c0_i32 = arith.constant 0 : i32
    %c0_i32_0 = arith.constant 0 : i32
    %c0_i32_1 = arith.constant 0 : i32
    return %c0_i32, %c0_i32_0 : i32, i32
  }
  func.func @transform_4(%arg0: i32) -> (i32, i32) {
    %c0_i32 = arith.constant 0 : i32
    %c0_i32_0 = arith.constant 0 : i32
    return %arg0, %c0_i32 : i32, i32
  }
}

</mosaic_0001>

<bundles_post_ra>
// kernel: tpu_custom_call.1
= control target key start
LH: loop header
LB: loop body
LE: loop exit
PB: predicated region body
PF: predicated region fallthrough
CT: control target
= control target key end

     0   :  { %9 = vsyncpa [#allocation3], 0  ;;  %s1187_s0 = inlined_call_operand.vmem [shape: s32[16,8], index: 0, kind: input, shape index: {}]   ;;  %s1188_s1 = inlined_call_operand.hbm [shape: f32[128,128], index: 1, kind: input, shape index: {}]   ;;  %s1189_s2 = inlined_call_operand.hbm [shape: f32[128,128], index: 2, kind: input, shape index: {}]   ;;  %s1190_s3 = inlined_call_operand.vmem [shape: f32[1,128], index: 3, kind: input, shape index: {}]   ;;  %s1191_s4 = inlined_call_operand.hbm [shape: f32[16,128], index: 4, kind: output, shape index: {}]  }
   0x1   :  { %10 = vsyncpa [#allocation6], 0 }
   0x2   :  { %11 = vsyncpa [#allocation4], 0 }
   0x3   :  { %13 = vsyncpa [#allocation4 + $0x1], 0  ;;  %s986_s15 = smov 0   ;;  %s988_s16 = smov 0  }
   0x4   :  { %s990_s17 = smov 0   ;;  %s992_s18 = smov 0  }
   0x5 LB: > { %s1007_s19 = sadd.s32 4294967295, %s943_s18   ;;  %s558_s20 = sadd.s32 4294967294, %s943_s18   ;;  %s943_s18 = sphi %s992_s18, %s1209_s18   ;;  %s939_s17 = sphi %s990_s17, %s1208_s17   ;;  %s935_s16 = sphi %s988_s16, %s1207_s16   ;;  %s931_s15 = sphi %s986_s15, %s1206_s15  }
   0x6   : > { %s1011_s21 = sadd.s32 1, %s943_s18   ;;  %s115_s22 = sadd.s32 1, %s939_s17 }
   0x7   : > { %s112_s23 = ssub.s32 %s943_s18, %s1011_s21  ;;  %p125_p0 = scmp.ne.s32.totalorder %s939_s17, %s935_s16 }
   0x8   : > { %p113_p1 = scmp.eq.s32.totalorder %s112_s23, 0  ;;  %p126_p2 = scmp.eq.s32.totalorder %s1007_s19, 1 }
   0x9   : > { %p131_p3 = scmp.ne.s32.totalorder %s935_s16, %s931_s15  ;;  %p132_p4 = scmp.eq.s32.totalorder %s558_s20, 1 }
   0xa   : > { %s1022_s24 = scalar_select %p113_p1, %s939_s17, %s115_s22  }
   0xb   : > { %p1024_p5 = por %p126_p2, %p125_p0  ;;  %p1028_p6 = por %p132_p4, %p131_p3 }
   0xc   : > { %p559_p7 = scmp.ge.s32.totalorder %s943_s18, 1  ;;  %p139_p8 = scmp.lt.s32.totalorder %s943_s18, 3 }
   0xd   : > { %s1195_s25 = scalar_select %p1024_p5, 1, 0 }
   0xe   : > { %s1196_s26 = scalar_select %p1028_p6, 1, 0 }
   0xf   : > { %p1192_p9 = scmp.eq.s32.totalorder %s1007_s19, 0  ;;  %p1035_p10 = pnand %p559_p7, %p139_p8 }
  0x10   : > { %s945_s28 = smov [#allocation2]   ;;  %s946_s5 = smov [#allocation5]  }
  0x11   : > { %s1197_s27 = scalar_select %p1035_p10, 1, 0 }
  0x12   : > { %s151_s29 = sshll.u32 %s945_s28, 4  ;;  %p743_p11 = pneg %p1035_p10  ;;  %s152_s29 = int_to_ptr.vmem [resolvable:$true] %s151_s29 }
  0x13   : > { %s164_s6 = sshll.u32 %s946_s5, 4  ;;  %s817_s9 = scalar_lea.hbm %s1188_s1, 2048  ;;  %s1047_s6 = int_to_ptr.vmem [resolvable:$true] %s164_s6 }
  0x14   : > { %p1043_p12 = pnand %p1192_p9, %p743_p11  ;;  %p818_p13 = scmp.ne.s32.totalorder %s1188_s1, %s817_s9 }
  0x15   : > { %p824_p3 = scmp.lt.u32.totalorder %s817_s9, %s1188_s1 }
  0x16   : > { %p819_p0 = pneg %p1043_p12 }
  0x18   : > { %p820_p1 = pnand %p819_p0, %p818_p13 }
  0x1a   : > { %p821_p2 = pneg %p820_p1 }
  0x1c   : > { %p826_p4 = pnand %p824_p3, %p821_p2 }
  0x1e   : > { %829 = shalt.err (!%p826_p4)
}
  0x1f   : > { %s830_s14 = scalar_lea.vmem %s152_s29, 2048  ;;  %p838_p9 = scmp.lt.s32.totalorder %s152_s29, %s152_s29 }
  0x20   : > { %p831_p7 = scmp.ne.s32.totalorder %s152_s29, %s830_s14  ;;  %p839_p6 = scmp.lt.s32.totalorder %s830_s14, %s830_s14 }
  0x22   : > { %p833_p8 = pnand %p831_p7, %p819_p0  ;;  %p840_p5 = por %p839_p6, %p838_p9 }
  0x24   : > { %p834_p11 = pneg %p833_p8 }
  0x26   : > { %p841_p10 = pnand %p840_p5, %p834_p11 }
  0x28   : > { %844 = shalt.err (!%p841_p10)
}
  0x29   : > { %s947_s20 = smov 128   ;;  %s948_s22 = smov 8  }
  0x2a   : > { %746 = dma.hbm_to_vmem [thread:$0]  (!%p1043_p12), %s1188_s1, 2048, %s152_s29, [#allocation3], %s947_s20, %s947_s20, %s948_s22  }
  0x2b   : > { %s845_s8 = scalar_lea.hbm %s1189_s2, 2048 }
  0x2c   : > { %p846_p13 = scmp.ne.s32.totalorder %s1189_s2, %s845_s8  ;;  %p852_p9 = scmp.lt.u32.totalorder %s845_s8, %s1189_s2 }
  0x2e   : > { %p848_p5 = pnand %p846_p13, %p819_p0 }
  0x30   : > { %p849_p6 = pneg %p848_p5 }
  0x32   : > { %p854_p10 = pnand %p852_p9, %p849_p6 }
  0x34   : > { %857 = shalt.err (!%p854_p10)
}
  0x35   : > { %s858_s29 = scalar_lea.vmem %s1047_s6, 2048  ;;  %p866_p4 = scmp.lt.s32.totalorder %s1047_s6, %s1047_s6 }
  0x36   : > { %p859_p1 = scmp.ne.s32.totalorder %s1047_s6, %s858_s29  ;;  %p867_p7 = scmp.lt.s32.totalorder %s858_s29, %s858_s29 }
  0x38   : > { %p861_p2 = pnand %p859_p1, %p819_p0  ;;  %p868_p8 = por %p867_p7, %p866_p4 }
  0x3a   : > { %p862_p3 = pneg %p861_p2 }
  0x3c   : > { %p869_p11 = pnand %p868_p8, %p862_p3 }
  0x3e   : > { %872 = shalt.err (!%p869_p11)
}
  0x3f   : > { %749 = dma.hbm_to_vmem [thread:$0]  (!%p1043_p12), %s1189_s2, 2048, %s1047_s6, [#allocation6], %s947_s20, %s947_s20, %s948_s22  }
  0x40   : > { %p1199_p13 = scmp.ne.s32.totalorder %s1197_s27, 0 }
  0x41   : > { %p1200_p5 = scmp.eq.s32.totalorder (!%p1199_p13), %s1007_s19, 0 }
  0x42   : > { %190 = sbr.rel (%p1199_p13) target bundleno = 688 (0x2b0), region = 36 }
  0x49   : > { %918 = dma.done.wait (%p1200_p5), [#allocation3], 2048   ;;  %p1201_p0 = pmov %p1200_p5 }
  0x4b   : > { %920 = vsyncadd (%p1201_p0), [#allocation3], 4294965248  ;;  %p1202_p6 = pmov %p1201_p0 }
  0x4c   : > { %p1203_p9 = pmov %p1201_p0 }
  0x4d   : > { %922 = dma.done.wait (%p1202_p6), [#allocation6], 2048  }
  0x4e   : > { %924 = vsyncadd (%p1203_p9), [#allocation6], 4294965248  ;;  %p219_p10 = scmp.lt.s32.totalorder %s1007_s19, 1  ;;  %v949_v0 = vmov 2   ;;  %v950_v1 = vmov 0   ;;  %v951_v2 = vmov 0.0|0.0   ;;  %v224_v59 = vlaneseq }
  0x4f   : > { %808 = vset.pattern.permute.xlu1 %v949_v0  ;;  %806 = vset.pattern.permute.xlu0 %v950_v1  ;;  %v282_v4 = vld [vmem:[#allocation2] sm:$0xff]  ;;  %v283_v5 = vld [vmem:[#allocation2 + $0x8] sm:$0xff]  ;;  %v284_v7 = vld [vmem:[#allocation2 + $0x10] sm:$0xff]  ;;  %v952_v10 = vmov 3   ;;  %v953_v11 = vmov 1   ;;  %v954_v17 = vmov 4  }
  0x50   : > { %s220_s27 = scalar_select %p219_p10, %s1007_s19, 1  ;;  %685 = vmatprep.subr.bf16.mxu0 %v951_v2  ;;  %709 = vmatprep.subr.bf16.mxu1 %v951_v2  ;;  %v686_v6 = vpack.c.bf16 %v283_v5, %v282_v4  ;;  %v285_v8 = vld [vmem:[#allocation2 + $0x18] sm:$0xff]  ;;  %v286_v12 = vld [vmem:[#allocation2 + $0x20] sm:$0xff]  ;;  %v287_v13 = vld [vmem:[#allocation2 + $0x28] sm:$0xff]  ;;  %v955_v18 = vmov 5   ;;  %v956_v22 = vmov 6  }
  0x51   : > { %v689_v9 = vpack.c.bf16 %v285_v8, %v284_v7  ;;  %v692_v14 = vpack.c.bf16 %v287_v13, %v286_v12  ;;  %v288_v15 = vld [vmem:[#allocation2 + $0x30] sm:$0xff]  ;;  %v289_v16 = vld [vmem:[#allocation2 + $0x38] sm:$0xff]  ;;  %v290_v20 = vld [vmem:[#allocation2 + $0x40] sm:$0xff]  ;;  %v957_v23 = vmov 7   ;;  %vm958_vm0 = vmmov 0   ;;  %s216_s5 = sand.u32 1, %s935_s16  }
  0x52   : > { %s567_s30 = sshll.u32 %s220_s27, 3  ;;  %687 = vmatpush3.bf16.msra.mxu0 %v686_v6  ;;  %v695_v19 = vpack.c.bf16 %v289_v16, %v288_v15  ;;  %v291_v21 = vld [vmem:[#allocation2 + $0x48] sm:$0xff]  ;;  %v292_v25 = vld [vmem:[#allocation2 + $0x50] sm:$0xff]  ;;  %v293_v26 = vld [vmem:[#allocation2 + $0x58] sm:$0xff]  ;;  %v959_v33 = vmov 0.0   ;;  %v225_v62 = vand.u32 127, %v224_v59 }
  0x53   : > { %s222_s22 = scalar_lea.vmem %s1187_s0, %s567_s30  ;;  %688 = vmatprep.subr.bf16.mxu0 %v951_v2  ;;  %v698_v24 = vpack.c.bf16 %v291_v21, %v290_v20  ;;  %v701_v27 = vpack.c.bf16 %v293_v26, %v292_v25  ;;  %v294_v28 = vld [vmem:[#allocation2 + $0x60] sm:$0xff]  ;;  %v295_v29 = vld [vmem:[#allocation2 + $0x68] sm:$0xff]  ;;  %v296_v31 = vld [vmem:[#allocation2 + $0x70] sm:$0xff]  ;;  %647 = vmatprep.mubr.msk.f32.mxu0 %vm958_vm0, %v959_v33  ;;  %s566_s7 = sshll.u32 %s216_s5, 3 }
  0x54   : > { %v223_v3 = vld [vmem:[%s222_s22] sm:$0xff]  ;;  %v704_v30 = vpack.c.bf16 %v295_v29, %v294_v28  ;;  %v297_v32 = vld [vmem:[#allocation2 + $0x78] sm:$0xff]  ;;  %v368_v34 = vld [vmem:[#allocation5] sm:$0xff]  ;;  %682 = vmatprep.mubr.msk.f32.mxu1 %vm958_vm0, %v959_v33  ;;  %s578_s8 = sshll.u32 %s1007_s19, 7  ;;  %s218_s9 = scalar_lea.vmem [#allocation7], %s566_s7 }
  0x55   : > { %241 = vperm.xlu1 %808, %v223_v3   ;;  %227 = vperm.xlu0 %806, %v223_v3   ;;  %v369_v35 = vld [vmem:[#allocation5 + $0x8] sm:$0xff]  ;;  %v370_v36 = vld [vmem:[#allocation5 + $0x10] sm:$0xff]  ;;  %v371_v38 = vld [vmem:[#allocation5 + $0x18] sm:$0xff]  ;;  %v707_v39 = vpack.c.bf16 %v297_v32, %v296_v31  ;;  %s477_s10 = sshll.u32 %s218_s9, 4  ;;  %s1145_s29 = scalar_lea.hbm %s1191_s4, %s578_s8  ;;  %s1147_s10 = int_to_ptr.vmem [resolvable:$true] %s477_s10 }
  0x56   : > { %690 = vmatpush3.bf16.msra.mxu0 %v689_v9  ;;  %v710_v37 = vpack.c.bf16 %v369_v35, %v368_v34  ;;  %v713_v40 = vpack.c.bf16 %v371_v38, %v370_v36  ;;  %v372_v41 = vld [vmem:[#allocation5 + $0x20] sm:$0xff]  ;;  %v373_v42 = vld [vmem:[#allocation5 + $0x28] sm:$0xff]  ;;  %v374_v44 = vld [vmem:[#allocation5 + $0x30] sm:$0xff]  ;;  %s464_s13 = scalar_lea.sflag [#allocation4], %s216_s5  ;;  %s873_s14 = scalar_lea.vmem %s1147_s10, 128 }
  0x57   : > { %691 = vmatprep.subr.bf16.mxu0 %v951_v2  ;;  %v716_v43 = vpack.c.bf16 %v373_v42, %v372_v41  ;;  %v375_v45 = vld [vmem:[#allocation5 + $0x38] sm:$0xff]  ;;  %v376_v47 = vld [vmem:[#allocation5 + $0x40] sm:$0xff]  ;;  %v377_v48 = vld [vmem:[#allocation5 + $0x48] sm:$0xff]  ;;  %p874_p12 = scmp.ne.s32.totalorder %s1147_s10, %s873_s14  ;;  %p1204_p1 = scmp.ne.s32.totalorder %s1195_s25, 0 }
  0x58   : > { %711 = vmatpush3.bf16.msra.mxu1 %v710_v37  ;;  %v719_v46 = vpack.c.bf16 %v375_v45, %v374_v44  ;;  %v722_v49 = vpack.c.bf16 %v377_v48, %v376_v47  ;;  %v378_v50 = vld [vmem:[#allocation5 + $0x50] sm:$0xff]  ;;  %v379_v51 = vld [vmem:[#allocation5 + $0x58] sm:$0xff]  ;;  %v380_v53 = vld [vmem:[#allocation5 + $0x60] sm:$0xff]  ;;  %s960_s19 = smov [#allocation7]  }
  0x59   : > { %809 = vset.pattern.permute.xlu1 %v952_v10  ;;  %807 = vset.pattern.permute.xlu0 %v953_v11  ;;  %v725_v52 = vpack.c.bf16 %v379_v51, %v378_v50  ;;  %v381_v54 = vld [vmem:[#allocation5 + $0x68] sm:$0xff]  ;;  %v382_v56 = vld [vmem:[#allocation5 + $0x70] sm:$0xff]  ;;  %v383_v57 = vld [vmem:[#allocation5 + $0x78] sm:$0xff]  ;;  %p875_p2 = pnand %p874_p12, %p1204_p1  ;;  %s877_s27 = sshll.u32 %s960_s19, 4  ;;  %s878_s27 = int_to_ptr.vmem [resolvable:$false] %s877_s27 }
  0x5a   : > { %248 = vperm.xlu1 %809, %v223_v3   ;;  %234 = vperm.xlu0 %807, %v223_v3   ;;  %v728_v55 = vpack.c.bf16 %v381_v54, %v380_v53  ;;  %v731_v58 = vpack.c.bf16 %v383_v57, %v382_v56  ;;  %s879_s30 = scalar_lea.vmem %s878_s27, 256  ;;  %p880_p4 = scmp.lt.s32.totalorder %s1147_s10, %s878_s27 }
  0x5b   : > { %693 = vmatpush3.bf16.msra.mxu0 %v692_v14  ;;  %712 = vmatprep.subr.bf16.mxu1 %v951_v2  ;;  %p876_p3 = pneg %p875_p2  ;;  %p881_p7 = scmp.lt.s32.totalorder %s879_s30, %s873_s14 }
  0x5c   : > { %694 = vmatprep.subr.bf16.mxu0 %v951_v2  ;;  %714 = vmatpush3.bf16.msra.mxu1 %v713_v40 }
  0x5d   : > { %715 = vmatprep.subr.bf16.mxu1 %v951_v2  ;;  %p882_p8 = por %p881_p7, %p880_p4 }
  0x5e   : > { %810 = vset.pattern.permute.xlu1 %v954_v17  ;;  %811 = vset.pattern.permute.xlu0 %v955_v18 }
  0x5f   : > { %255 = vperm.xlu1 %810, %v223_v3   ;;  %262 = vperm.xlu0 %811, %v223_v3   ;;  %p883_p11 = pnand %p882_p8, %p876_p3 }
  0x60   : > { %696 = vmatpush3.bf16.msra.mxu0 %v695_v19  ;;  %717 = vmatpush3.bf16.msra.mxu1 %v716_v43 }
  0x61   : > { %697 = vmatprep.subr.bf16.mxu0 %v951_v2  ;;  %718 = vmatprep.subr.bf16.mxu1 %v951_v2 }
  0x63   : > { %812 = vset.pattern.permute.xlu1 %v956_v22  ;;  %814 = vset.pattern.permute.xlu0 %v957_v23  ;;  %v576_v22 = vld [vmem:[%s1190_s3] ss:$0 sm:$0xff] }
  0x64   : > { %269 = vperm.xlu1 %812, %v223_v3   ;;  %699 = vmatpush3.bf16.msra.mxu0 %v698_v24 }
  0x65   : > { %700 = vmatprep.subr.bf16.mxu0 %v951_v2  ;;  %720 = vmatpush3.bf16.msra.mxu1 %v719_v46 }
  0x66   : > { %721 = vmatprep.subr.bf16.mxu1 %v951_v2 }
  0x68   : > { %813 = vset.pattern.permute.xlu1 %v957_v23  ;;  %702 = vmatpush3.bf16.msra.mxu0 %v701_v27 }
  0x69   : > { %276 = vperm.xlu1 %813, %v223_v3   ;;  %703 = vmatprep.subr.bf16.mxu0 %v951_v2 }
  0x6a   : > { %723 = vmatpush3.bf16.msra.mxu1 %v722_v49 }
  0x6b   : > { %724 = vmatprep.subr.bf16.mxu1 %v951_v2 }
  0x6c   : > { %705 = vmatpush3.bf16.msra.mxu0 %v704_v30 }
  0x6d   : > { %706 = vmatprep.subr.bf16.mxu0 %v951_v2 }
  0x6e   : > { %726 = vmatpush3.bf16.msra.mxu1 %v725_v52 }
  0x6f   : > { %727 = vmatprep.subr.bf16.mxu1 %v951_v2 }
  0x70   : > { %708 = vmatpush3.bf16.msra.mxu0 %v707_v39 }
  0x72   : > { %729 = vmatpush3.bf16.msra.mxu1 %v728_v55 }
  0x73   : > { %730 = vmatprep.subr.bf16.mxu1 %v951_v2 }
  0x76   : > { %732 = vmatpush3.bf16.msra.mxu1 %v731_v58 }
  0xd4   : > { %v242_v60 = vpop.permute.xlu1 %241  ;;  %v228_v61 = vpop.permute.xlu0 %227 }
  0xd5   : > { %vm229_vm1 = vcmp.eq.s32.totalorder %v228_v61, %v225_v62  ;;  %vm243_vm2 = vcmp.eq.s32.totalorder %v242_v60, %v225_v62 }
  0xd6   : > { %v568_v1 = vsel %vm229_vm1, 1.0, %v959_v33  ;;  %v570_v5 = vsel %vm243_vm2, 1.0, %v959_v33 }
  0xd9   : > { %v249_v63 = vpop.permute.xlu1 %248  ;;  %v235_v0 = vpop.permute.xlu0 %234 }
  0xda   : > { %vm236_vm3 = vcmp.eq.s32.totalorder %v235_v0, %v225_v62  ;;  %vm250_vm4 = vcmp.eq.s32.totalorder %v249_v63, %v225_v62 }
  0xdb   : > { %v569_v3 = vsel %vm236_vm3, 1.0, %v959_v33  ;;  %v571_v8 = vsel %vm250_vm4, 1.0, %v959_v33 }
  0xdc   : > { %v239_v4 = vadd.f32 %v569_v3, %v568_v1 }
  0xde   : > { %v246_v6 = vadd.f32 %v570_v5, %v239_v4  ;;  %v256_v2 = vpop.permute.xlu1 %255  ;;  %v263_v7 = vpop.permute.xlu0 %262 }
  0xdf   : > { %vm257_vm5 = vcmp.eq.s32.totalorder %v256_v2, %v225_v62  ;;  %vm264_vm6 = vcmp.eq.s32.totalorder %v263_v7, %v225_v62 }
  0xe0   : > { %v253_v9 = vadd.f32 %v571_v8, %v246_v6  ;;  %v572_v10 = vsel %vm257_vm5, 1.0, %v959_v33  ;;  %v573_v12 = vsel %vm264_vm6, 1.0, %v959_v33 }
  0xe2   : > { %v260_v11 = vadd.f32 %v572_v10, %v253_v9 }
  0xe3   : > { %v270_v13 = vpop.permute.xlu1 %269 }
  0xe4   : > { %vm271_vm7 = vcmp.eq.s32.totalorder %v270_v13, %v225_v62  ;;  %v267_v14 = vadd.f32 %v573_v12, %v260_v11 }
  0xe5   : > { %v574_v15 = vsel %vm271_vm7, 1.0, %v959_v33 }
  0xe6   : > { %v274_v17 = vadd.f32 %v574_v15, %v267_v14 }
  0xe8   : > { %v277_v16 = vpop.permute.xlu1 %276 }
  0xe9   : > { %vm278_vm8 = vcmp.eq.s32.totalorder %v277_v16, %v225_v62 }
  0xea   : > { %v575_v18 = vsel %vm278_vm8, 1.0, %v959_v33 }
  0xeb   : > { %v281_v19 = vadd.f32 %v575_v18, %v274_v17 }
  0xed   : > { %648 = vmatmul.mubr.f32.vlgmr.msra.gmra.mrb[0].mxu0 %v281_v19 }
 0x1c0   : > { %v364_v20 = vpop.f32.mrb[0].mxu0 }
 0x1c1   : > { %v649_v21 = vpop.f32.mrb[1].mxu0  ;;  %683 = vmatmul.mubr.f32.vlgmr.msra.gmra.mrb[0].mxu1 %v364_v20 }
 0x294   : > { %v457_v23 = vpop.f32.mrb[0].mxu1 }
 0x295   : > { %v458_v24 = vadd.f32 %v576_v22, %v457_v23  ;;  %v684_v25 = vpop.f32.mrb[1].mxu1 }
 0x297   : > { %815 = vtanh.f32 %v458_v24 }
 0x2a1   : > { %v816_v26 = vpop.eup %815 }
 0x2a2   : > { %462 = vst [vmem:[%s218_s9] sm:$0xff] %v816_v26 }
 0x2a3   : > { %886 = shalt.err (!%p883_p11)
}
 0x2a4   : > { %s887_s6 = scalar_lea.hbm %s1145_s29, 128  ;;  %s891_s23 = scalar_lea.hbm %s1191_s4, 256 }
 0x2a5   : > { %p888_p13 = scmp.ne.s32.totalorder %s1145_s29, %s887_s6  ;;  %p892_p6 = scmp.lt.u32.totalorder %s1145_s29, %s1191_s4 }
 0x2a6   : > { %p893_p9 = scmp.lt.u32.totalorder %s891_s23, %s887_s6  ;;  %p895_p12 = scmp.lt.u32.totalorder %s887_s6, %s1145_s29 }
 0x2a7   : > { %p889_p5 = pnand %p888_p13, %p1204_p1 }
 0x2a8   : > { %p894_p10 = por %p893_p9, %p892_p6 }
 0x2a9   : > { %p890_p0 = pneg %p889_p5 }
 0x2aa   : > { %p896_p2 = por %p895_p12, %p894_p10 }
 0x2ac   : > { %p897_p3 = pnand %p896_p2, %p890_p0 }
 0x2ae   : > { %900 = shalt.err (!%p897_p3)
}
 0x2af   : > { %741 = dma.vmem_to_hbm [thread:$0]  (%p1204_p1), %s1147_s10, 128, %s1145_s29, %s464_s13  }
 0x2b0 PF: > { %p758_p4 = scmp.ge.s32.totalorder %s943_s18, 2  ;;  %s489_s7 = sand.u32 1, %s931_s15  }
 0x2b1   : > { %p1205_p7 = scmp.ne.s32.totalorder %s1196_s26, 0  ;;  %s490_s8 = scalar_lea.sflag [#allocation4], %s489_s7 }
 0x2b3   : > { %p751_p8 = pnand %p758_p4, %p1205_p7 }
 0x2b5   : > { %926 = dma.done.wait (!%p751_p8), %s490_s8, 128  }
 0x2b6   : > { %928 = vsyncadd (!%p751_p8), %s490_s8, 4294967168  ;;  %p16_p11 = scmp.ge.s32.totalorder %s1011_s21, 4   ;;  %s1206_s15 = smov %s935_s16 }
 0x2b7   : > { %s1207_s16 = smov %s939_s17  ;;  %s1208_s17 = smov %s1022_s24 }
 0x2b8   : > { %s1209_s18 = smov %s1011_s21  ;;  %18 = sbr.rel (!%p16_p11) target bundleno = 5 (0x5), region = 80 }
 0x2bf   :  { %495 = vsyncpa [#allocation3], 1 }
 0x2c0   :  { %497 = vsyncpa [#allocation3 + $0x1], 1 }
 0x2c1   :  { %498 = vsyncpa [#allocation6], 1 }
 0x2c2   :  { %499 = vsyncpa [#allocation4], 1 }
 0x2c3   :  { %501 = vsyncpa [#allocation4 + $0x1], 1 }

</bundles_post_ra>
